<compile_context>
chip_gen: v7x
topology: tpu7x:2x2x1
jax: 0.10.0
libtpu: 0.0.40
codegen_flags: <defaults>
</compile_context>

<pallas_src>
import jax
import jax.numpy as jnp
from jax import lax
from jax.experimental import pallas as pl
from jax.experimental.pallas import tpu as pltpu


def _patch_attention_kernel(x_ref, w_ref, o_ref):
    """One block of BB images: fused QKV projection (BN + bias folded into the
    weight) followed by the re-associated patch attention.

    x_ref: (BB, ICA, HWP) bf16  -- IC input channels + one ones channel, HW on lanes
    w_ref: (3*OCP, ICA)   f32   -- folded [Wq|bq ; Wk|bk ; Wv|bv] (BN, h**-0.5 folded)
    o_ref: (BB, OCP, HWP) f32   -- padded rows/lanes -> unmasked stores
    """
    ocp = w_ref.shape[0] // 3
    bb = x_ref.shape[0]
    w = w_ref[...]

    # Statically unrolled per-image loop (BB is capped small by the wrapper);
    # equivalent to lax.fori_loop(..., unroll=True).  The kernel is HBM-bound,
    # so the tiny per-image weight push on the MXU is hidden under the DMA.
    for i in range(bb):
        x = x_ref[i].astype(jnp.float32)                            # (ICA, HWP)
        qkv = jnp.dot(w, x, preferred_element_type=jnp.float32)     # (3*OCP, HWP)
        q = qkv[:ocp]
        k = qkv[ocp:2 * ocp]
        v = qkv[2 * ocp:]
        # out = (V K^T) (s*Q): contract the tiny channel dim first, never
        # materialize the (HW, HW) pixelMap.  NT then NN matmul forms only.
        a = lax.dot_general(v, k, (((1,), (1,)), ((), ())),
                            preferred_element_type=jnp.float32)     # (OCP, OCP)
        o_ref[i] = jnp.dot(a, q, preferred_element_type=jnp.float32)


def _round_up(v, m):
    return -(-v // m) * m


def _choose_block_batch(b, per_image_bytes):
    """Images per grid step: ~1 MiB blocks, keep the grid pipelined, cap unroll."""
    bb = max(1, min((1 << 20) // max(per_image_bytes, 1), 16))
    min_steps = 4 if b >= 4 else 2          # keep >=2 steps (v7x pipelining)
    bb = min(bb, max(1, b // min_steps))
    return max(1, min(bb, b))


def patch_attention_forward(x_nchw, params, eps=1e-5, input_dtype=jnp.bfloat16):
    """Forward of PatchAttentionLayer (training-mode BatchNorm2d, default affine).

    params = (wq, bq, wk, bk, wv, bv) with w*: (OC, IC) (Conv2d 1x1 weights,
    kernel dims squeezed) and b*: (OC,).
    """
    wq, bq, wk, bk, wv, bv = params
    b, ic, h, w = x_nchw.shape
    oc = wq.shape[0]
    # The reference's final `patchOutput.view(b, c, h, w)` requires oc == ic.
    assert oc == ic, "PatchAttentionLayer's output view requires oc == ic"
    hw = h * w
    hwp = _round_up(hw, 128)     # lane-dense (unmasked) loads/stores
    ocp = _round_up(oc, 8)       # sublane-aligned Q/K/V slices and output rows
    ica = ic + 1                 # +1 ones channel carrying the folded bias
    dim_scale = float(h) ** (-0.5)

    # NCHW flattened is already the lane-dense (B, C, HW) kernel layout; append
    # the ones channel and quantize to bf16 in the same single materialization.
    x_flat = x_nchw.reshape(b, ic, hw)
    ones = jnp.ones((b, 1, hw), x_flat.dtype)
    x_aug = jnp.concatenate([x_flat, ones], axis=1).astype(input_dtype)  # (B, ICA, HW)

    # ---- Training-mode BatchNorm folded analytically into the conv weights:
    # y = W x + b is linear, so mean_y = W mu + b and var_y = diag(W Cov(x) W^T).
    # One Gram-matrix pass over x_aug yields channel sums (vs the ones channel)
    # and E[x x^T] simultaneously — no centered-x temp, no extra f32 copy of x.
    # TODO(synk): E[xx^T] - mu mu^T cancels badly if |mean| >> std; fall back to
    # the centered two-pass form for such inputs.
    g = jnp.einsum('bip,bjp->ij', x_aug, x_aug,
                   preferred_element_type=jnp.float32)               # (ICA, ICA)
    n = float(b * hw)
    mean_x = g[:ic, ic] / n                                          # (IC,)
    cov_x = g[:ic, :ic] / n - jnp.outer(mean_x, mean_x)              # (IC, IC)

    def pad_rows(a):
        pad = ocp - a.shape[0]
        if pad == 0:
            return a
        return jnp.concatenate(
            [a, jnp.zeros((pad,) + a.shape[1:], a.dtype)], axis=0)

    w_all = jnp.concatenate([pad_rows(wq.astype(jnp.float32)),
                             pad_rows(wk.astype(jnp.float32)),
                             pad_rows(wv.astype(jnp.float32))], axis=0)  # (3*OCP, IC)
    b_all = jnp.concatenate([pad_rows(bq.astype(jnp.float32)),
                             pad_rows(bk.astype(jnp.float32)),
                             pad_rows(bv.astype(jnp.float32))], axis=0)  # (3*OCP,)

    mean_y = w_all @ mean_x + b_all                                  # (3*OCP,)
    var_y = jnp.sum((w_all @ cov_x) * w_all, axis=-1)                # (3*OCP,)
    bn_scale = lax.rsqrt(var_y + eps)
    # Fold the pixelMap scale h**-0.5 into the Q rows so the kernel never
    # multiplies the attention matrix by a scalar.
    row_mult = jnp.concatenate([jnp.full((ocp,), dim_scale, jnp.float32),
                                jnp.ones((2 * ocp,), jnp.float32)])
    eff = bn_scale * row_mult
    w_fold = w_all * eff[:, None]                                    # (3*OCP, IC)
    b_fold = eff * (b_all - mean_y)                                  # (3*OCP,)
    w_aug = jnp.concatenate([w_fold, b_fold[:, None]], axis=1)       # (3*OCP, ICA)

    # ---- Batch blocking: BB images per grid step, zero-padded batch / lanes.
    in_itemsize = jnp.dtype(input_dtype).itemsize
    per_image_bytes = ica * hwp * in_itemsize + ocp * hwp * 4
    bb = _choose_block_batch(b, per_image_bytes)
    b_pad = _round_up(b, bb)
    if b_pad != b or hwp != hw:
        # Zero-padded images / pixels (including their ones channel) produce
        # exactly-zero Q/K/V and hence exactly-zero outputs; sliced off below.
        x_aug = jnp.pad(x_aug, ((0, b_pad - b), (0, 0), (0, hwp - hw)))

    out = pl.pallas_call(
        _patch_attention_kernel,
        out_shape=jax.ShapeDtypeStruct((b_pad, ocp, hwp), jnp.float32),
        grid_spec=pltpu.PrefetchScalarGridSpec(
            num_scalar_prefetch=0,
            grid=(b_pad // bb,),
            in_specs=[
                pl.BlockSpec((bb, ica, hwp), lambda i: (i, 0, 0)),
                pl.BlockSpec((3 * ocp, ica), lambda i: (0, 0)),
            ],
            out_specs=pl.BlockSpec((bb, ocp, hwp), lambda i: (i, 0, 0)),
        ),
        compiler_params=pltpu.CompilerParams(
            dimension_semantics=("parallel",)),
    )(x_aug, w_aug)

    # Padded channel rows / pixels are exactly zero; slice them off and restore
    # the module's (B, C, H, W) view.
    return out[:b, :oc, :hw].reshape(b, oc, h, w)


def _reference_forward(x_nchw, params, eps=1e-5):
    # Pure-JAX mirror of the PyTorch forward (training-mode BatchNorm2d with
    # biased batch statistics, default affine), kept in the original op order.
    wq, bq, wk, bk, wv, bv = params
    b, ic, h, w = x_nchw.shape
    hw = h * w
    x = x_nchw.reshape(b, ic, hw).astype(jnp.float32)                # (B, IC, HW)

    def conv_bn(wm, bias):
        y = jnp.einsum('oi,bip->bop', wm, x) + bias[None, :, None]   # (B, OC, HW)
        mean = jnp.mean(y, axis=(0, 2), keepdims=True)
        var = jnp.mean(jnp.square(y - mean), axis=(0, 2), keepdims=True)
        return (y - mean) * lax.rsqrt(var + eps)

    q = conv_bn(wq, bq)
    k = conv_bn(wk, bk)
    v = conv_bn(wv, bv)
    pm = jnp.einsum('bcq,bck->bqk', q, k) * (float(h) ** (-0.5))
    out = jnp.einsum('bqk,bck->bcq', pm, v)
    return out.reshape(b, ic, h, w)


if __name__ == "__main__":
    B, IC, OC, H, W = 2, 4, 4, 16, 16   # oc == ic, required by the final view()

    key = jax.random.PRNGKey(0)
    k_wq, k_wk, k_wv, k_bq, k_bk, k_bv, k_x = jax.random.split(key, 7)

    # Conv2d(ic, oc, 1, 1) weights stored as (OC, IC) (1x1 kernel dims squeezed).
    wq = jax.random.normal(k_wq, (OC, IC), jnp.float32) * 0.2
    wk = jax.random.normal(k_wk, (OC, IC), jnp.float32) * 0.2
    wv = jax.random.normal(k_wv, (OC, IC), jnp.float32) * 0.2
    bq = jax.random.normal(k_bq, (OC,), jnp.float32) * 0.1
    bk = jax.random.normal(k_bk, (OC,), jnp.float32) * 0.1
    bv = jax.random.normal(k_bv, (OC,), jnp.float32) * 0.1
    params = (wq, bq, wk, bk, wv, bv)

    x = jax.random.normal(k_x, (B, IC, H, W), jnp.float32)

    fwd = jax.jit(patch_attention_forward)
    out = jax.block_until_ready(fwd(x, params))

    # The kernel path stores x in bf16 (HBM-traffic optimization); evaluate the
    # f32 reference on the same bf16-quantized input so the comparison isolates
    # kernel-math error from the (intentional) input quantization.
    x_q = x.astype(jnp.bfloat16).astype(jnp.float32)
    ref = jax.block_until_ready(_reference_forward(x_q, params))

    assert out.shape == (B, IC, H, W)
    assert jnp.allclose(out, ref, atol=2e-3, rtol=2e-3), "mismatch vs reference"

    print("KERNEL_OK")
</pallas_src>

<mosaic_0001>
module attributes {stable_mosaic.version = 11 : i64} {
  func.func @_patch_attention_kernel(%arg0: i32, %arg1: memref<1x5x256xbf16, #tpu.memory_space<vmem>>, %arg2: memref<24x5xf32, #tpu.memory_space<vmem>>, %arg3: memref<1x8x256xf32, #tpu.memory_space<vmem>>) attributes {dimension_semantics = [#tpu.dimension_semantics<parallel>], iteration_bounds = array<i64: 2>, scalar_prefetch = 0 : i64, scratch_operands = 0 : i64, tpu.core_type = #tpu.core_type<tc>, window_params = [{transform_indices = @transform_0, window_bounds = array<i64: 1, 5, 256>}, {pipeline_mode = #tpu.pipeline_mode<synchronous>, transform_indices = @transform_1, window_bounds = array<i64: 24, 5>}, {transform_indices = @transform_2, window_bounds = array<i64: 1, 8, 256>}]} {
    %c0 = arith.constant 0 : index
    %c0_0 = arith.constant 0 : index
    %0 = vector.load %arg2[%c0, %c0_0] : memref<24x5xf32, #tpu.memory_space<vmem>>, vector<24x5xf32>
    %c0_1 = arith.constant 0 : index
    %c0_2 = arith.constant 0 : index
    %c0_3 = arith.constant 0 : index
    %1 = vector.load %arg1[%c0_1, %c0_2, %c0_3] : memref<1x5x256xbf16, #tpu.memory_space<vmem>>, vector<1x5x256xbf16>
    %2 = vector.shape_cast %1 : vector<1x5x256xbf16> to vector<5x256xbf16>
    %3 = arith.extf %2 : vector<5x256xbf16> to vector<5x256xf32>
    %cst = arith.constant dense<0.000000e+00> : vector<24x256xf32>
    %4 = tpu.matmul %0, %3, %cst {dimension_numbers = #tpu.dot_dimension_numbers<[1], [0], [0], [1], [0, 0, 1, 1], [], []>} : vector<24x5xf32>, vector<5x256xf32>, vector<24x256xf32> -> vector<24x256xf32>
    %5 = vector.extract_strided_slice %4 {offsets = [0, 0], sizes = [8, 256], strides = [1, 1]} : vector<24x256xf32> to vector<8x256xf32>
    %6 = vector.extract_strided_slice %4 {offsets = [8, 0], sizes = [8, 256], strides = [1, 1]} : vector<24x256xf32> to vector<8x256xf32>
    %7 = vector.extract_strided_slice %4 {offsets = [16, 0], sizes = [8, 256], strides = [1, 1]} : vector<24x256xf32> to vector<8x256xf32>
    %cst_4 = arith.constant dense<0.000000e+00> : vector<8x8xf32>
    %8 = tpu.matmul %7, %6, %cst_4 {dimension_numbers = #tpu.dot_dimension_numbers<[1], [1], [0], [0], [0, 0, 1, 0], [], []>} : vector<8x256xf32>, vector<8x256xf32>, vector<8x8xf32> -> vector<8x8xf32>
    %cst_5 = arith.constant dense<0.000000e+00> : vector<8x256xf32>
    %9 = tpu.matmul %8, %5, %cst_5 {dimension_numbers = #tpu.dot_dimension_numbers<[1], [0], [0], [1], [0, 0, 1, 1], [], []>} : vector<8x8xf32>, vector<8x256xf32>, vector<8x256xf32> -> vector<8x256xf32>
    %c0_6 = arith.constant 0 : index
    %c0_7 = arith.constant 0 : index
    %c0_8 = arith.constant 0 : index
    %10 = vector.load %arg3[%c0_6, %c0_7, %c0_8] : memref<1x8x256xf32, #tpu.memory_space<vmem>>, vector<1x8x256xf32>
    %11 = vector.shape_cast %10 : vector<1x8x256xf32> to vector<8x256xf32>
    %12 = vector.shape_cast %9 : vector<8x256xf32> to vector<1x8x256xf32>
    tpu.vector_store %arg3[%c0_6, %c0_7, %c0_8], %12 {strides = array<i32>} : memref<1x8x256xf32, #tpu.memory_space<vmem>>, vector<1x8x256xf32>,
    return
  }
  func.func @transform_0(%arg0: i32) -> (i32, i32, i32) {
    %c0_i32 = arith.constant 0 : i32
    %c0_i32_0 = arith.constant 0 : i32
    %c0_i32_1 = arith.constant 0 : i32
    return %arg0, %c0_i32, %c0_i32_0 : i32, i32, i32
  }
  func.func @transform_1(%arg0: i32) -> (i32, i32) {
    %c0_i32 = arith.constant 0 : i32
    %c0_i32_0 = arith.constant 0 : i32
    %c0_i32_1 = arith.constant 0 : i32
    return %c0_i32, %c0_i32_0 : i32, i32
  }
  func.func @transform_2(%arg0: i32) -> (i32, i32, i32) {
    %c0_i32 = arith.constant 0 : i32
    %c0_i32_0 = arith.constant 0 : i32
    %c0_i32_1 = arith.constant 0 : i32
    return %arg0, %c0_i32, %c0_i32_0 : i32, i32, i32
  }
}

</mosaic_0001>

<bundles_post_ra>
// kernel: patch_attention_forward.1
= control target key start
LH: loop header
LB: loop body
LE: loop exit
PB: predicated region body
PF: predicated region fallthrough
CT: control target
= control target key end

     0   :  { %s504_s9 = smov 0   ;;  %s534_s0 = inlined_call_operand.vmem [shape: bf16[2,5,256], index: 0, kind: input, shape index: {}]   ;;  %s535_s1 = inlined_call_operand.vmem [shape: f32[24,5], index: 1, kind: input, shape index: {}]   ;;  %s536_s2 = inlined_call_operand.vmem [shape: f32[2,8,256], index: 2, kind: output, shape index: {}]  }
   0x1 LB: > { %s452_s10 = sadd.s32 4294967295, %s486_s9   ;;  %p456_p0 = scmp.ge.s32.totalorder %s486_s9, 1  ;;  %s486_s9 = sphi %s504_s9, %s12_s9  }
   0x2   : > { %p112_p1 = scmp.lt.s32.totalorder %s486_s9, 3 }
   0x4   : > { %p113_p2 = pnand %p456_p0, %p112_p1 }
   0x5   : > { %p134_p3 = scmp.lt.s32.totalorder (!%p113_p2), %s452_s10, 1  ;;  %v488_v0 = vmov (!%p113_p2), 0.0   ;;  %vm160_vm0 = vcmask (!%p113_p2), 1044480   ;;  %v144_v4 = vld [vmem:[%s535_s1] sm:$0xff] (!%p113_p2)  ;;  %vm150_vm1 = vcmask (!%p113_p2), 39936   ;;  %v145_v5 = vld [vmem:[%s535_s1 + $0x8] sm:$0xff] (!%p113_p2) }
   0x6   : > { %116 = sbr.rel (%p113_p2) target bundleno = 669 (0x29d), region = 28  ;;  %231 = vmatprep.mubr.f32.mxu0 (!%p113_p2), %v488_v0  ;;  %v146_v6 = vld [vmem:[%s535_s1 + $0x10] sm:$0xff] (!%p113_p2)  ;;  %vm320_vm2 = vcmask (!%p113_p2), 64512  }
   0xd   : > { %s538_s10 = smov (!%p134_p3, %s452_s10), 1 }
   0xe   : > { %s469_s11 = sshll.u32 %s538_s10, 3  ;;  %s470_s21 = sshll.u32 %s538_s10, 4 }
   0xf   : > { %s138_s14 = scalar_lea.vmem %s534_s0, %s469_s11  ;;  %s143_s24 = scalar_lea.vmem %s536_s2, %s470_s21 }
  0x10   : > { %v147_v1 = vld [vmem:[%s138_s14] sm:$0x77] }
  0x11   : > { %v148_v2 = vunpack.c.l.bf16 %v147_v1  ;;  %v149_v3 = vunpack.c.h.bf16 %v147_v1 }
  0x13   : > { %461 = vmatprep.subr.msk.mxu0 %vm160_vm0, %v149_v3 }
  0x14   : > { %462 = vmatpush1.msk.msra.mxu0 %vm160_vm0, %v148_v2 }
  0x15   : > { %463 = vmatmul.mubr.msk.f32.vlgmr.msra.gmra.mrb[0].mxu0 %vm150_vm1, %v144_v4 }
  0x16   : > { %237 = vmatprep.mubr.f32.mxu0 %v488_v0 }
  0x19   : > { %464 = vmatmul.mubr.msk.f32.gmra.mrb[2].mxu0 %vm150_vm1, %v145_v5 }
  0x1a   : > { %243 = vmatprep.mubr.f32.mxu0 %v488_v0 }
  0x1d   : > { %465 = vmatmul.mubr.msk.f32.gmra.mrb[4].mxu0 %vm150_vm1, %v146_v6 }
  0xe8   : > { %v233_v7 = vpop.f32.mrb[0].mxu0 }
  0xe9   : > { %v235_v8 = vpop.f32.mrb[1].mxu0 }
  0xec   : > { %v239_v9 = vpop.f32.mrb[2].mxu0 }
  0xed   : > { %v241_v10 = vpop.f32.mrb[3].mxu0 }
  0xee   : > { %250 = vmatprep.subr.mxu1 %v241_v10 }
  0xef   : > { %251 = vmatpush1.xpose.msra.mxu1 %v239_v9 }
  0xf0   : > { %v245_v11 = vpop.f32.mrb[4].mxu0  ;;  %324 = vmatprep.subr.mxu1 %v235_v8 }
  0xf1   : > { %v247_v12 = vpop.f32.mrb[5].mxu0 }
  0xf2   : > { %314 = vmatprep.mubr.f32.mxu1 %v247_v12 }
  0xf3   : > { %315 = vmatmul.mubr.f32.vlgmr.msra.gmra.mrb[0].mxu1 %v245_v11 }
  0xf4   : > { %325 = vmatpush1.msra.mxu1 %v233_v7  ;;  %388 = vmatprep.mubr.f32.mxu1 %v488_v0 }
 0x1c6   : > { %v316_v13 = vpop.f32.mrb[0].mxu1 }
 0x1c7   : > { %v318_v14 = vpop.f32.mrb[1].mxu1  ;;  %466 = vmatmul.mubr.msk.f32.vlgmr.msra.gmra.mrb[2].mxu1 %vm320_vm2, %v316_v13 }
 0x29a   : > { %v390_v15 = vpop.f32.mrb[2].mxu1 }
 0x29b   : > { %395 = vst [vmem:[%s143_s24] sm:$0xff] %v390_v15  ;;  %v392_v16 = vpop.f32.mrb[3].mxu1 }
 0x29c   : > { %396 = vst [vmem:[%s143_s24 + $0x8] sm:$0xff] %v392_v16 }
 0x29d PF: > { %s12_s9 = sadd.s32 1, %s486_s9  }
 0x29e   : > { %p9_p4 = scmp.ge.s32.totalorder %s12_s9, 4  }
 0x2a0   :  { %11 = sbr.rel (!%p9_p4) target bundleno = 1 (0x1), region = 58 }

</bundles_post_ra>
